<compile_context>
chip_gen: v5e
topology: v5e:2x2
jax: 0.10.0
libtpu: 0.0.40
codegen_flags: <defaults>
</compile_context>

<pallas_src>
import functools

import jax
import jax.numpy as jnp
from jax.experimental import pallas as pl
from jax.experimental.pallas import tpu as pltpu


_FLAT_MATMUL_MAX_ELEMS = 1024   # use the fully lane-dense MXU-permutation path when H*W <= this
_TARGET_STEP_BYTES = 8 << 20    # ~2 MiB per tile x (in+out) x double-buffer
_MIN_GRID_STEPS = 8             # keep the BlockSpec pipeline >= 8 steps when divisors allow


# ---------------------------------------------------------------------------
# helpers: VMEM sizing / tile choosers
# ---------------------------------------------------------------------------

def _pad_up(n, m):
    return -(-int(n) // int(m)) * int(m)


def _sublanes(itemsize):
    # sublane tile height for packed dtypes (f32: 8, bf16: 16, int8: 32)
    return max(8, 32 // max(1, int(itemsize)))


def _tile_bytes_general(cblk, hblk, d, w, dtype):
    """Double-buffered in+out VMEM bytes for one grid step of the tiled path."""
    itemsize = jnp.dtype(dtype).itemsize
    sub = _sublanes(itemsize)
    in_elems = cblk * _pad_up(hblk, sub) * _pad_up(d * d * w, 128)
    out_elems = cblk * d * d * _pad_up(hblk, sub) * _pad_up(w, 128)
    return 2 * (in_elems + out_elems) * itemsize


def _tile_bytes_flat(cblk, n, dtype):
    itemsize = jnp.dtype(dtype).itemsize
    sub = _sublanes(itemsize)
    tile = _pad_up(cblk, sub) * _pad_up(n, 128) * itemsize
    return 2 * 2 * tile  # (in + out) x double-buffer


def _choose_plane_block(n_planes, step_bytes_fn, target_bytes, budget_bytes,
                        min_steps=_MIN_GRID_STEPS):
    """Pick how many (batch, channel) planes to process per grid step.

    Prefers: fits the VMEM budget; >= min_steps grid steps (pipeline depth); ~target-sized
    tiles; an even step count (v7x has 2 TensorCores splitting the 'parallel' axis).
    Returns None if even a single plane does not fit (caller falls back to a row split).
    """
    divs = [c for c in range(1, n_planes + 1) if n_planes % c == 0]
    fits = [c for c in divs if step_bytes_fn(c) <= budget_bytes]
    if not fits:
        return None
    deep = [c for c in fits if n_planes // c >= min_steps] or [min(fits)]
    sized = [c for c in deep if step_bytes_fn(c) <= target_bytes] or [min(deep)]
    best = max(sized)
    even = [c for c in sized if (n_planes // c) % 2 == 0]
    if even and 2 * max(even) >= best:
        best = max(even)
    return best


def _choose_row_block(h, d, w, dtype, target_bytes, budget_bytes):
    """Spatial fallback: split the h rows of a single plane into 8-aligned row groups."""
    cands = [r for r in range(8, h + 1, 8) if h % r == 0]
    if not cands:
        return h  # best effort: no (8,128)-friendly divisor, keep the full plane
    fits = [r for r in cands if _tile_bytes_general(1, r, d, w, dtype) <= budget_bytes]
    if not fits:
        return min(cands)
    sized = [r for r in fits
             if _tile_bytes_general(1, r, d, w, dtype) <= target_bytes] or [min(fits)]
    return max(sized)


def _vmem_limit_bytes():
    try:
        vmem_cap = int(pltpu.get_tpu_info().vmem_capacity_bytes)
    except Exception:
        vmem_cap = 64 << 20  # conservative (v7x per-TC capacity)
    # Don't chase 96 MiB tiles: cap at 64 MiB (v5e/v6e) / 48 MiB (v7x) and leave headroom.
    return min(vmem_cap * 3 // 4, 64 << 20)


# ---------------------------------------------------------------------------
# kernels
# ---------------------------------------------------------------------------

def _unshuffle_matmul_kernel(x_ref, m_ref, o_ref):
    # Flat fast path. x_ref: (1, cblk, N), m_ref: (N, N) one-hot permutation, o_ref: (1, cblk, N).
    # One MXU matmul does the whole space-to-depth permutation; the store is a single
    # unmasked full-lane write.  0/1 matrix => exact for float inputs.
    xm = x_ref[0]                              # (cblk, N) lane-dense load
    z = jnp.dot(xm, m_ref[...], preferred_element_type=jnp.float32)
    o_ref[0] = z.astype(o_ref.dtype)


def _unshuffle_tiles_kernel(x_ref, o_ref, *, d, w):
    # General tiled path.
    #   x_ref: (cblk, hblk, d*W)   -- row-pair-merged view, W = d*w (original width)
    #   o_ref: (cblk, d*d, hblk, w)
    # Row phase y is a *contiguous* static lane slice (no sublane strides); only the column
    # phase needs a lane-strided slice.  Each piece is stored directly (no stack).
    W = d * w
    x = x_ref[...]
    for y in range(d):
        for xx in range(d):
            o_ref[:, y * d + xx] = x[:, :, y * W + xx:(y + 1) * W:d]


# ---------------------------------------------------------------------------
# wrapper
# ---------------------------------------------------------------------------

def _build_flat_perm(H, W, d, dtype):
    """(H*W, H*W) one-hot matrix M with M[s, dest(s)] = 1 implementing pixel-unshuffle."""
    n = H * W
    h, w = H // d, W // d
    s = jnp.arange(n, dtype=jnp.int32)
    r, c = s // W, s % W
    i, y = r // d, r % d
    j, xx = c // d, c % d
    t = (y * d + xx) * (h * w) + i * w + j
    return (t[:, None] == jnp.arange(n, dtype=jnp.int32)[None, :]).astype(dtype)


def pixel_unshuffle(x, downscale_factor):
    """Pallas equivalent of the PyTorch pixel_unshuffle (grouped one-hot conv)."""
    d = int(downscale_factor)
    B, C, H, W = x.shape
    assert H % d == 0 and W % d == 0, "spatial dims must be divisible by downscale_factor"
    h, w = H // d, W // d
    n_planes = B * C
    itemsize = jnp.dtype(x.dtype).itemsize

    vmem_limit = _vmem_limit_bytes()
    tile_budget = vmem_limit // 2
    mem_bytes = 2 * x.size * itemsize  # pure read + write

    use_matmul = (jnp.issubdtype(x.dtype, jnp.floating)
                  and itemsize >= 2
                  and H * W <= _FLAT_MATMUL_MAX_ELEMS)

    if use_matmul:
        # ---- fully lane-dense MXU-permutation path (small planes) ----
        n = H * W
        cblk = _choose_plane_block(n_planes,
                                   lambda c: _tile_bytes_flat(c, n, x.dtype),
                                   _TARGET_STEP_BYTES, tile_budget)
        cblk = cblk or n_planes  # tiny planes always fit; keep a safe fallback anyway
        g = n_planes // cblk
        # (G, cblk, N) views are metadata-only reshapes of contiguous NCHW input/output.
        x_view = x.reshape(g, cblk, n)
        perm = _build_flat_perm(H, W, d, x.dtype)

        out = pl.pallas_call(
            _unshuffle_matmul_kernel,
            out_shape=jax.ShapeDtypeStruct((g, cblk, n), x.dtype),
            grid=(g,),
            in_specs=[
                pl.BlockSpec((1, cblk, n), lambda gi: (gi, 0, 0)),
                pl.BlockSpec((n, n), lambda gi: (0, 0)),  # constant block -> fetched once
            ],
            out_specs=pl.BlockSpec((1, cblk, n), lambda gi: (gi, 0, 0)),
            compiler_params=pltpu.CompilerParams(
                dimension_semantics=("parallel",),
                vmem_limit_bytes=int(vmem_limit),
            ),
            cost_estimate=pl.CostEstimate(
                flops=2 * n_planes * n * n,
                transcendentals=0,
                bytes_accessed=mem_bytes + perm.size * itemsize,
            ),
        )(x_view, perm)
        return out.reshape(B, C * d * d, h, w)

    # ---- general tiled path (large planes / any dtype) ----
    # Free reshape: (B, C, H, W) -> (B*C, h, d*W); view[p, i, y*W + c] == x[b, ch, i*d + y, c].
    x_view = x.reshape(n_planes, h, d * W)

    cblk = _choose_plane_block(n_planes,
                               lambda c: _tile_bytes_general(c, h, d, w, x.dtype),
                               _TARGET_STEP_BYTES, tile_budget)
    if cblk is None:
        # Even one plane exceeds the budget: split the h rows instead.
        cblk = 1
        hblk = _choose_row_block(h, d, w, x.dtype, _TARGET_STEP_BYTES, tile_budget)
    else:
        hblk = h

    grid = (n_planes // cblk, h // hblk)
    kernel = functools.partial(_unshuffle_tiles_kernel, d=d, w=w)

    out = pl.pallas_call(
        kernel,
        out_shape=jax.ShapeDtypeStruct((n_planes, d * d, h, w), x.dtype),
        grid=grid,
        in_specs=[pl.BlockSpec((cblk, hblk, d * W), lambda g, r: (g, r, 0))],
        out_specs=pl.BlockSpec((cblk, d * d, hblk, w), lambda g, r: (g, 0, r, 0)),
        compiler_params=pltpu.CompilerParams(
            dimension_semantics=("parallel", "parallel"),
            vmem_limit_bytes=int(vmem_limit),
        ),
        cost_estimate=pl.CostEstimate(flops=0, transcendentals=0, bytes_accessed=mem_bytes),
    )(x_view)

    # Free reshape back to the PyTorch layout (out channel = c*d*d + y*d + x).
    return out.reshape(B, C * d * d, h, w)


# ---------------------------------------------------------------------------
# reference + self-test
# ---------------------------------------------------------------------------

def _reference(x, d):
    B, C, H, W = x.shape
    h, w = H // d, W // d
    y = x.reshape(B, C, h, d, w, d)
    y = jnp.transpose(y, (0, 1, 3, 5, 2, 4))  # (B, C, d, d, h, w)
    return y.reshape(B, C * d * d, h, w)


if __name__ == "__main__":
    key = jax.random.PRNGKey(0)
    k_small, k_large = jax.random.split(key)

    # Small shape from the module spec: exercises the lane-dense MXU-permutation path.
    B, C, H, W = 2, 4, 16, 16
    d = 2
    x = jax.random.normal(k_small, (B, C, H, W), dtype=jnp.float32)
    out = jax.block_until_ready(pixel_unshuffle(x, d))
    ref = _reference(x, d)
    assert out.shape == (B, C * d * d, H // d, W // d)
    assert bool(jnp.array_equal(out, ref)), "flat-path mismatch vs reference"

    # Larger plane (H*W above the flat-path threshold): exercises the general tiled path.
    B2, C2, H2, W2 = 1, 2, 64, 64
    x2 = jax.random.normal(k_large, (B2, C2, H2, W2), dtype=jnp.float32)
    out2 = jax.block_until_ready(pixel_unshuffle(x2, d))
    ref2 = _reference(x2, d)
    assert out2.shape == (B2, C2 * d * d, H2 // d, W2 // d)
    assert bool(jnp.array_equal(out2, ref2)), "tiled-path mismatch vs reference"

    print("KERNEL_OK")
</pallas_src>

<mosaic_0001>
module attributes {stable_mosaic.version = 11 : i64} {
  func.func @_unshuffle_matmul_kernel(%arg0: i32, %arg1: memref<1x1x256xf32, #tpu.memory_space<vmem>>, %arg2: memref<256x256xf32, #tpu.memory_space<vmem>>, %arg3: memref<1x1x256xf32, #tpu.memory_space<vmem>>) attributes {dimension_semantics = [#tpu.dimension_semantics<parallel>], iteration_bounds = array<i64: 8>, scalar_prefetch = 0 : i64, scratch_operands = 0 : i64, tpu.core_type = #tpu.core_type<tc>, window_params = [{transform_indices = @transform_0, window_bounds = array<i64: 1, 1, 256>}, {pipeline_mode = #tpu.pipeline_mode<synchronous>, transform_indices = @transform_1, window_bounds = array<i64: 256, 256>}, {transform_indices = @transform_2, window_bounds = array<i64: 1, 1, 256>}]} {
    %c0 = arith.constant 0 : index
    %c0_0 = arith.constant 0 : index
    %c0_1 = arith.constant 0 : index
    %0 = vector.load %arg1[%c0, %c0_0, %c0_1] : memref<1x1x256xf32, #tpu.memory_space<vmem>>, vector<1x1x256xf32>
    %1 = vector.shape_cast %0 : vector<1x1x256xf32> to vector<1x256xf32>
    %c0_2 = arith.constant 0 : index
    %c0_3 = arith.constant 0 : index
    %2 = vector.load %arg2[%c0_2, %c0_3] : memref<256x256xf32, #tpu.memory_space<vmem>>, vector<256x256xf32>
    %cst = arith.constant dense<0.000000e+00> : vector<1x256xf32>
    %3 = tpu.matmul %1, %2, %cst {dimension_numbers = #tpu.dot_dimension_numbers<[1], [0], [0], [1], [0, 0, 1, 1], [], []>} : vector<1x256xf32>, vector<256x256xf32>, vector<1x256xf32> -> vector<1x256xf32>
    %c0_4 = arith.constant 0 : index
    %c0_5 = arith.constant 0 : index
    %c0_6 = arith.constant 0 : index
    %4 = vector.load %arg3[%c0_4, %c0_5, %c0_6] : memref<1x1x256xf32, #tpu.memory_space<vmem>>, vector<1x1x256xf32>
    %5 = vector.shape_cast %4 : vector<1x1x256xf32> to vector<1x256xf32>
    %6 = vector.shape_cast %3 : vector<1x256xf32> to vector<1x1x256xf32>
    tpu.vector_store %arg3[%c0_4, %c0_5, %c0_6], %6 {strides = array<i32>} : memref<1x1x256xf32, #tpu.memory_space<vmem>>, vector<1x1x256xf32>,
    return
  }
  func.func @transform_0(%arg0: i32) -> (i32, i32, i32) {
    %c0_i32 = arith.constant 0 : i32
    %c0_i32_0 = arith.constant 0 : i32
    %c0_i32_1 = arith.constant 0 : i32
    return %arg0, %c0_i32, %c0_i32_0 : i32, i32, i32
  }
  func.func @transform_1(%arg0: i32) -> (i32, i32) {
    %c0_i32 = arith.constant 0 : i32
    %c0_i32_0 = arith.constant 0 : i32
    %c0_i32_1 = arith.constant 0 : i32
    return %c0_i32, %c0_i32_0 : i32, i32
  }
  func.func @transform_2(%arg0: i32) -> (i32, i32, i32) {
    %c0_i32 = arith.constant 0 : i32
    %c0_i32_0 = arith.constant 0 : i32
    %c0_i32_1 = arith.constant 0 : i32
    return %arg0, %c0_i32, %c0_i32_0 : i32, i32, i32
  }
}

</mosaic_0001>

<bundles_post_ra>
// kernel: tpu_custom_call.1
= control target key start
LH: loop header
LB: loop body
LE: loop exit
PB: predicated region body
PF: predicated region fallthrough
CT: control target
= control target key end

     0   :  { %7 = vsyncpa [#allocation3], 0  ;;  %s799_s0 = inlined_call_operand.hbm [shape: f32[8,1,256], index: 0, kind: input, shape index: {}]   ;;  %s800_s1 = inlined_call_operand.hbm [shape: f32[256,256], index: 1, kind: input, shape index: {}]   ;;  %s801_s2 = inlined_call_operand.hbm [shape: f32[8,1,256], index: 2, kind: output, shape index: {}]  }
   0x1   :  { %9 = vsyncpa [#allocation3 + $0x1], 0 }
   0x2   :  { %10 = vsyncpa [#allocation6], 0 }
   0x3   :  { %11 = vsyncpa [#allocation4], 0 }
   0x4   :  { %13 = vsyncpa [#allocation4 + $0x1], 0  ;;  %s658_s9 = smov 0   ;;  %s660_s10 = smov 0  }
   0x5   :  { %s662_s11 = smov 0   ;;  %s664_s12 = smov 0  }
   0x6 LB: > { %s108_s15 = sshll.u32 %s800_s1, 4  ;;  %s682_s16 = sadd.s32 4294967295, %s638_s12   ;;  %s638_s12 = sphi %s664_s12, %s810_s12   ;;  %s634_s11 = sphi %s662_s11, %s809_s11   ;;  %s630_s10 = sphi %s660_s10, %s808_s10   ;;  %s626_s9 = sphi %s658_s9, %s807_s9   ;;  %s109_s15 = int_to_ptr.hbm [resolvable:$true] %s108_s15 }
   0x7   : > { %p436_p0 = scmp.ge.s32.totalorder %s638_s12, 1  ;;  %p40_p1 = scmp.eq.s32.totalorder %s682_s16, 0 }
   0x8   : > { %p97_p2 = scmp.lt.s32.totalorder %s638_s12, 9  ;;  %s640_s18 = smov [#allocation5]  }
   0x9   : > { %s110_s19 = sshll.u32 %s640_s18, 4  ;;  %s641_s20 = smov 256   ;;  %s111_s19 = int_to_ptr.vmem [resolvable:$true] %s110_s19 }
   0xa   : > { %p687_p3 = pnand %p436_p0, %p97_p2  ;;  %s642_s21 = smov 16  }
   0xb   : > { %s435_s22 = sadd.s32 4294967294, %s638_s12   ;;  %s697_s23 = sadd.s32 1, %s638_s12  }
   0xc   : > { %p457_p4 = pneg %p687_p3  ;;  %s26_s24 = sadd.s32 1, %s634_s11 }
   0xd   : > { %s23_s25 = ssub.s32 %s638_s12, %s697_s23  ;;  %p33_p6 = scmp.ne.s32.totalorder %s634_s11, %s630_s10 }
   0xe   : > { %p458_p5 = pnand %p457_p4, %p40_p1  ;;  %p24_p7 = scmp.eq.s32.totalorder %s23_s25, 0 }
   0xf   : > { %p34_p8 = scmp.eq.s32.totalorder %s638_s12, 0  ;;  %p39_p9 = scmp.ne.s32.totalorder %s630_s10, %s626_s9 }
  0x10   : > { %460 = dma.hbm_to_vmem [thread:$0]  (!%p458_p5), %s109_s15, 8192, %s111_s19, [#allocation6], %s641_s20, %s641_s20, %s642_s21  }
  0x11   : > { %p84_p10 = scmp.eq.s32.totalorder %s682_s16, 7  ;;  %p713_p11 = por %p40_p1, %p39_p9 }
  0x12   : > { %s709_s26 = scalar_select %p24_p7, %s634_s11, %s26_s24  }
  0x13   : > { %p717_p12 = por %p84_p10, %p33_p6  ;;  %p90_p13 = scmp.eq.s32.totalorder %s435_s22, 7 }
  0x14   : > { %p35_p0 = por %p34_p8, %p33_p6  ;;  %s124_s29 = sand.u32 1, %s634_s11  }
  0x15   : > { %p722_p2 = por %p90_p13, %p39_p9  ;;  %p470_p4 = scmp.lt.s32.totalorder %s638_s12, 8 }
  0x16   : > { %s439_s3 = sshll.u32 %s124_s29, 1  ;;  %s440_s4 = sshll.u32 %s638_s12, 1 }
  0x17   : > { %s132_s7 = scalar_lea.hbm %s799_s0, %s440_s4  ;;  %s128_s13 = scalar_lea.vmem [#allocation2], %s439_s3 }
  0x18   : > { %s134_s8 = sshll.u32 %s132_s7, 4  ;;  %s136_s14 = sshll.u32 %s128_s13, 4  ;;  %s135_s8 = int_to_ptr.hbm [resolvable:$true] %s134_s8  ;;  %s137_s14 = int_to_ptr.vmem [resolvable:$true] %s136_s14 }
  0x19   : > { %p731_p5 = pnand %p470_p4, %p35_p0  ;;  %s125_s18 = scalar_lea.sflag [#allocation3], %s124_s29 }
  0x1a   : > { %s538_s19 = sshra.s32 %s135_s8, 4  ;;  %s545_s24 = scalar_lea.hbm %s799_s0, 16  ;;  %s539_s19 = int_to_ptr.hbm [resolvable:$true] %s538_s19 }
  0x1b   : > { %s540_s20 = scalar_lea.hbm %s539_s19, 2  ;;  %p542_p7 = pneg %p731_p5 }
  0x1c   : > { %p541_p6 = scmp.ne.s32.totalorder %s539_s19, %s540_s20  ;;  %p546_p10 = scmp.lt.s32.totalorder %s539_s19, %s799_s0 }
  0x1d   : > { %p547_p13 = scmp.lt.s32.totalorder %s545_s24, %s540_s20 }
  0x1e   : > { %p543_p8 = pnand %p542_p7, %p541_p6 }
  0x1f   : > { %p548_p0 = por %p547_p13, %p546_p10 }
  0x20   : > { %p544_p9 = pneg %p543_p8 }
  0x22   : > { %p549_p4 = pnand %p548_p0, %p544_p9 }
  0x24   : > { %552 = shalt.err (!%p549_p4)
}
  0x25   : > { %464 = dma.hbm_to_vmem [thread:$0]  (!%p731_p5), %s135_s8, 32, %s137_s14, %s125_s18  }
  0x26   : > { %145 = sbr.rel (%p687_p3) target bundleno = 219 (0xdb), region = 28  ;;  %s748_s29 = sand.u32 (!%p687_p3), 1, %s630_s10  }
  0x27   : > { %s442_s4 = sshll.u32 (!%p687_p3), %s748_s29, 1  ;;  %s148_s5 = scalar_lea.sflag (!%p687_p3), [#allocation3], %s748_s29 }
  0x28   : > { %s754_s6 = scalar_lea.vmem (!%p687_p3), [#allocation2], %s442_s4 }
  0x2b   : > { %613 = dma.done.wait (%p713_p11), %s148_s5, 32  }
  0x2c   : > { %615 = vsyncadd (%p713_p11), %s148_s5, 4294967264 }
  0x2d   : > { %617 = dma.done.wait (%p40_p1), [#allocation6], 8192  }
  0x2e   : > { %619 = vsyncadd (%p40_p1), [#allocation6], 4294959104  ;;  %v210_v0 = vld [vmem:[#allocation5 + $0xf8] sm:$0xff]  ;;  %v208_v2 = vld [vmem:[#allocation5 + $0xe8] sm:$0xff]  ;;  %s446_s17 = sshll.u32 %s682_s16, 1  ;;  %s177_s13 = scalar_lea.vmem [#allocation7], %s442_s4 }
  0x2f   : > { %v242_v1 = vld [vmem:[#allocation5 + $0x1f8] sm:$0xff]  ;;  %288 = vmatpush.msra.mxu2 %v210_v0  ;;  %v240_v3 = vld [vmem:[#allocation5 + $0x1e8] sm:$0xff]  ;;  %v209_v6 = vld [vmem:[#allocation5 + $0xf0] sm:$0xff]  ;;  %s350_s8 = scalar_lea.hbm %s801_s2, %s446_s17  ;;  %s352_s14 = sshll.u32 %s177_s13, 4  ;;  %vm331_vm0 = vcmask 1040384   ;;  %s353_s14 = int_to_ptr.vmem [resolvable:$true] %s352_s14 }
  0x30   : > { %308 = vmatpush.msra.mxu3 %v242_v1  ;;  %v206_v4 = vld [vmem:[#allocation5 + $0xd8] sm:$0xff]  ;;  %v204_v7 = vld [vmem:[#allocation5 + $0xc8] sm:$0xff]  ;;  %v241_v8 = vld [vmem:[#allocation5 + $0x1f0] sm:$0xff]  ;;  %248 = vmatpush.msra.mxu0 %v209_v6  ;;  %s354_s15 = sshll.u32 %s350_s8, 4  ;;  %s340_s16 = scalar_lea.sflag [#allocation4], %s748_s29  ;;  %s355_s15 = int_to_ptr.hbm [resolvable:$true] %s354_s15 }
  0x31   : > { %v238_v5 = vld [vmem:[#allocation5 + $0x1d8] sm:$0xff]  ;;  %289 = vmatpush.msra.mxu2 %v208_v2  ;;  %v236_v9 = vld [vmem:[#allocation5 + $0x1c8] sm:$0xff]  ;;  %268 = vmatpush.msra.mxu1 %v241_v8  ;;  %v207_v10 = vld [vmem:[#allocation5 + $0xe0] sm:$0xff]  ;;  %s582_s18 = sshra.s32 %s355_s15, 4  ;;  %s588_s22 = scalar_lea.hbm %s801_s2, 16  ;;  %s583_s18 = int_to_ptr.hbm [resolvable:$true] %s582_s18 }
  0x32   : > { %309 = vmatpush.msra.mxu3 %v240_v3  ;;  %v239_v11 = vld [vmem:[#allocation5 + $0x1e0] sm:$0xff]  ;;  %v205_v12 = vld [vmem:[#allocation5 + $0xd0] sm:$0xff]  ;;  %v202_v14 = vld [vmem:[#allocation5 + $0xb8] sm:$0xff]  ;;  %249 = vmatpush.msra.mxu0 %v207_v10  ;;  %s584_s19 = scalar_lea.hbm %s583_s18, 2  ;;  %p589_p5 = scmp.lt.s32.totalorder %s583_s18, %s801_s2 }
  0x33   : > { %290 = vmatpush.msra.mxu2 %v206_v4  ;;  %v237_v13 = vld [vmem:[#allocation5 + $0x1d0] sm:$0xff]  ;;  %v234_v15 = vld [vmem:[#allocation5 + $0x1b8] sm:$0xff]  ;;  %269 = vmatpush.msra.mxu1 %v239_v11  ;;  %v203_v16 = vld [vmem:[#allocation5 + $0xc0] sm:$0xff]  ;;  %p585_p1 = scmp.ne.s32.totalorder %s583_s18, %s584_s19  ;;  %p590_p6 = scmp.lt.s32.totalorder %s588_s22, %s584_s19 }
  0x34   : > { %310 = vmatpush.msra.mxu3 %v238_v5  ;;  %v235_v17 = vld [vmem:[#allocation5 + $0x1c0] sm:$0xff]  ;;  %v200_v18 = vld [vmem:[#allocation5 + $0xa8] sm:$0xff]  ;;  %250 = vmatpush.msra.mxu0 %v205_v12  ;;  %v201_v20 = vld [vmem:[#allocation5 + $0xb0] sm:$0xff]  ;;  %v334_v5 = vlaneseq }
  0x35   : > { %291 = vmatpush.msra.mxu2 %v204_v7  ;;  %v232_v19 = vld [vmem:[#allocation5 + $0x1a8] sm:$0xff]  ;;  %270 = vmatpush.msra.mxu1 %v237_v13  ;;  %v233_v21 = vld [vmem:[#allocation5 + $0x1b0] sm:$0xff]  ;;  %v198_v22 = vld [vmem:[#allocation5 + $0x98] sm:$0xff]  ;;  %p586_p3 = pnand %p585_p1, %p717_p12  ;;  %p591_p7 = por %p590_p6, %p589_p5 }
  0x36   : > { %311 = vmatpush.msra.mxu3 %v236_v9  ;;  %v230_v23 = vld [vmem:[#allocation5 + $0x198] sm:$0xff]  ;;  %251 = vmatpush.msra.mxu0 %v203_v16  ;;  %v199_v24 = vld [vmem:[#allocation5 + $0xa0] sm:$0xff]  ;;  %v196_v26 = vld [vmem:[#allocation5 + $0x88] sm:$0xff]  ;;  %vm336_vm1 = vcmp.lt.s32.totalorder %v334_v5, 256 }
  0x37   : > { %292 = vmatpush.msra.mxu2 %v202_v14  ;;  %271 = vmatpush.msra.mxu1 %v235_v17  ;;  %v231_v25 = vld [vmem:[#allocation5 + $0x1a0] sm:$0xff]  ;;  %v228_v27 = vld [vmem:[#allocation5 + $0x188] sm:$0xff]  ;;  %v197_v28 = vld [vmem:[#allocation5 + $0x90] sm:$0xff]  ;;  %p587_p11 = pneg %p586_p3 }
  0x38   : > { %312 = vmatpush.msra.mxu3 %v234_v15  ;;  %252 = vmatpush.msra.mxu0 %v201_v20  ;;  %v229_v29 = vld [vmem:[#allocation5 + $0x190] sm:$0xff]  ;;  %v194_v30 = vld [vmem:[#allocation5 + $0x78] sm:$0xff]  ;;  %v195_v32 = vld [vmem:[#allocation5 + $0x80] sm:$0xff] }
  0x39   : > { %293 = vmatpush.msra.mxu2 %v200_v18  ;;  %272 = vmatpush.msra.mxu1 %v233_v21  ;;  %v226_v31 = vld [vmem:[#allocation5 + $0x178] sm:$0xff]  ;;  %v227_v33 = vld [vmem:[#allocation5 + $0x180] sm:$0xff]  ;;  %v192_v34 = vld [vmem:[#allocation5 + $0x68] sm:$0xff]  ;;  %p592_p8 = pnand %p591_p7, %p587_p11 }
  0x3a   : > { %313 = vmatpush.msra.mxu3 %v232_v19  ;;  %253 = vmatpush.msra.mxu0 %v199_v24  ;;  %v224_v35 = vld [vmem:[#allocation5 + $0x168] sm:$0xff]  ;;  %v193_v36 = vld [vmem:[#allocation5 + $0x70] sm:$0xff]  ;;  %v190_v38 = vld [vmem:[#allocation5 + $0x58] sm:$0xff] }
  0x3b   : > { %294 = vmatpush.msra.mxu2 %v198_v22  ;;  %273 = vmatpush.msra.mxu1 %v231_v25  ;;  %v225_v37 = vld [vmem:[#allocation5 + $0x170] sm:$0xff]  ;;  %v222_v39 = vld [vmem:[#allocation5 + $0x158] sm:$0xff]  ;;  %v191_v40 = vld [vmem:[#allocation5 + $0x60] sm:$0xff] }
  0x3c   : > { %314 = vmatpush.msra.mxu3 %v230_v23  ;;  %254 = vmatpush.msra.mxu0 %v197_v28  ;;  %v223_v41 = vld [vmem:[#allocation5 + $0x160] sm:$0xff]  ;;  %v188_v42 = vld [vmem:[#allocation5 + $0x48] sm:$0xff]  ;;  %v189_v44 = vld [vmem:[#allocation5 + $0x50] sm:$0xff] }
  0x3d   : > { %295 = vmatpush.msra.mxu2 %v196_v26  ;;  %274 = vmatpush.msra.mxu1 %v229_v29  ;;  %v220_v43 = vld [vmem:[#allocation5 + $0x148] sm:$0xff]  ;;  %v221_v45 = vld [vmem:[#allocation5 + $0x150] sm:$0xff]  ;;  %v186_v46 = vld [vmem:[#allocation5 + $0x38] sm:$0xff] }
  0x3e   : > { %315 = vmatpush.msra.mxu3 %v228_v27  ;;  %255 = vmatpush.msra.mxu0 %v195_v32  ;;  %v218_v47 = vld [vmem:[#allocation5 + $0x138] sm:$0xff]  ;;  %v187_v48 = vld [vmem:[#allocation5 + $0x40] sm:$0xff]  ;;  %v184_v50 = vld [vmem:[#allocation5 + $0x28] sm:$0xff] }
  0x3f   : > { %296 = vmatpush.msra.mxu2 %v194_v30  ;;  %275 = vmatpush.msra.mxu1 %v227_v33  ;;  %v219_v49 = vld [vmem:[#allocation5 + $0x140] sm:$0xff]  ;;  %v216_v51 = vld [vmem:[#allocation5 + $0x128] sm:$0xff]  ;;  %v178_v52 = vld [vmem:[%s754_s6] sm:$0x3] }
  0x40   : > { %316 = vmatpush.msra.mxu3 %v226_v31  ;;  %256 = vmatpush.msra.mxu0 %v193_v36  ;;  %v185_v53 = vld [vmem:[#allocation5 + $0x30] sm:$0xff]  ;;  %v182_v55 = vld [vmem:[#allocation5 + $0x18] sm:$0xff]  ;;  %v183_v57 = vld [vmem:[#allocation5 + $0x20] sm:$0xff]  ;;  %v244_v61 = vperm.slane %v178_v52, 0  ;;  %v245_v62 = vperm.slane %v178_v52, 1 }
  0x41   : > { %297 = vmatpush.msra.mxu2 %v192_v34  ;;  %276 = vmatpush.msra.mxu1 %v225_v37  ;;  %v217_v54 = vld [vmem:[#allocation5 + $0x130] sm:$0xff]  ;;  %v214_v56 = vld [vmem:[#allocation5 + $0x118] sm:$0xff]  ;;  %v215_v58 = vld [vmem:[#allocation5 + $0x120] sm:$0xff] }
  0x42   : > { %317 = vmatpush.msra.mxu3 %v224_v35  ;;  %257 = vmatpush.msra.mxu0 %v191_v40  ;;  %v180_v59 = vld [vmem:[#allocation5 + $0x8] sm:$0xff]  ;;  %v181_v63 = vld [vmem:[#allocation5 + $0x10] sm:$0xff]  ;;  %v179_v1 = vld [vmem:[#allocation5] sm:$0xff] }
  0x43   : > { %298 = vmatpush.msra.mxu2 %v190_v38  ;;  %277 = vmatpush.msra.mxu1 %v223_v41  ;;  %v212_v60 = vld [vmem:[#allocation5 + $0x108] sm:$0xff]  ;;  %v213_v0 = vld [vmem:[#allocation5 + $0x110] sm:$0xff]  ;;  %v211_v2 = vld [vmem:[#allocation5 + $0x100] sm:$0xff] }
  0x44   : > { %318 = vmatpush.msra.mxu3 %v222_v39  ;;  %258 = vmatpush.msra.mxu0 %v189_v44 }
  0x45   : > { %299 = vmatpush.msra.mxu2 %v188_v42  ;;  %278 = vmatpush.msra.mxu1 %v221_v45 }
  0x46   : > { %319 = vmatpush.msra.mxu3 %v220_v43  ;;  %259 = vmatpush.msra.mxu0 %v187_v48 }
  0x47   : > { %300 = vmatpush.msra.mxu2 %v186_v46  ;;  %279 = vmatpush.msra.mxu1 %v219_v49 }
  0x48   : > { %320 = vmatpush.msra.mxu3 %v218_v47  ;;  %260 = vmatpush.msra.mxu0 %v185_v53 }
  0x49   : > { %301 = vmatpush.msra.mxu2 %v184_v50  ;;  %280 = vmatpush.msra.mxu1 %v217_v54 }
  0x4a   : > { %321 = vmatpush.msra.mxu3 %v216_v51  ;;  %261 = vmatpush.msra.mxu0 %v183_v57 }
  0x4b   : > { %302 = vmatpush.msra.mxu2 %v182_v55  ;;  %281 = vmatpush.msra.mxu1 %v215_v58 }
  0x4c   : > { %322 = vmatpush.msra.mxu3 %v214_v56  ;;  %262 = vmatpush.msra.mxu0 %v181_v63 }
  0x4d   : > { %303 = vmatpush.msra.mxu2 %v180_v59  ;;  %282 = vmatpush.msra.mxu1 %v213_v0 }
  0x4e   : > { %323 = vmatpush.msra.mxu3 %v212_v60  ;;  %304 = vmatmul.f32.vlgmr.msra.gmra.mxu2 %v244_v61 }
  0x4f   : > { %324 = vmatmul.f32.vlgmr.msra.gmra.mxu3 %v245_v62  ;;  %263 = vmatpush.msra.mxu0 %v179_v1 }
  0x50   : > { %283 = vmatpush.msra.mxu1 %v211_v2  ;;  %264 = vmatmul.f32.vlgmr.msra.gmra.mxu0 %v244_v61 }
  0x51   : > { %284 = vmatmul.f32.vlgmr.msra.gmra.mxu1 %v245_v62 }
  0xcd   : > { %v265_v3 = vpop.f32.mrf.mxu0 }
  0xce   : > { %v285_v4 = vpop.f32.mrf.mxu1 }
  0xcf   : > { %v286_v9 = vadd.f32 %v285_v4, %v265_v3 }
  0xd1   : > { %v305_v6 = vpop.f32.mrf.mxu2 }
  0xd2   : > { %v325_v7 = vpop.f32.mrf.mxu3 }
  0xd3   : > { %v326_v8 = vadd.f32 %v325_v7, %v305_v6 }
  0xd5   : > { %v330_v10 = vrot.slane %v326_v8, 7 }
  0xd7   : > { %v332_v11 = vsel %vm331_vm0, %v286_v9, %v330_v10 }
  0xd8   : > { %338 = vst.msk [vmem:[%s177_s13] sm:$0x3] %vm336_vm1, %v332_v11 }
  0xd9   : > { %595 = shalt.err (!%p592_p8)
}
  0xda   : > { %455 = dma.vmem_to_hbm [thread:$0]  (%p717_p12), %s353_s14, 32, %s355_s15, %s340_s16  }
  0xdb PF: > { %p472_p9 = scmp.ge.s32.totalorder %s638_s12, 2  ;;  %s366_s3 = sand.u32 1, %s626_s9  }
  0xdc   : > { %s367_s29 = scalar_lea.sflag [#allocation4], %s366_s3 }
  0xdd   : > { %p466_p10 = pnand %p472_p9, %p722_p2 }
  0xdf   : > { %p467_p13 = pneg %p466_p10 }
  0xe1   : > { %621 = dma.done.wait (%p467_p13), %s367_s29, 32  }
  0xe2   : > { %623 = vsyncadd (%p467_p13), %s367_s29, 4294967264  ;;  %p16_p0 = scmp.ge.s32.totalorder %s697_s23, 10   ;;  %s807_s9 = smov %s630_s10 }
  0xe3   : > { %s808_s10 = smov %s634_s11  ;;  %s809_s11 = smov %s709_s26 }
  0xe4   : > { %s810_s12 = smov %s697_s23  ;;  %18 = sbr.rel (!%p16_p0) target bundleno = 6 (0x6), region = 77 }
  0xe9   :  { %373 = vsyncpa [#allocation3], 1 }
  0xea   :  { %375 = vsyncpa [#allocation3 + $0x1], 1 }
  0xeb   :  { %376 = vsyncpa [#allocation6], 1 }
  0xec   :  { %377 = vsyncpa [#allocation4], 1 }
  0xed   :  { %379 = vsyncpa [#allocation4 + $0x1], 1 }

</bundles_post_ra>
